<compile_context>
chip_gen: v7x
topology: tpu7x:2x2x1
jax: 0.10.0
libtpu: 0.0.40
codegen_flags: <defaults>
</compile_context>

<pallas_src>
import jax
import jax.numpy as jnp
from jax import lax
from jax.experimental import pallas as pl
from jax.experimental.pallas import tpu as pltpu


# ---------------------------------------------------------------------------
# Kernel factory: whole Actor forward for one batch tile, params from one slab.
# ---------------------------------------------------------------------------
def make_actor_kernel(dims, offs):
    nb_pos, nb_laser, L1, L2, H2, nb_actions = dims
    r_wc1, r_wc2, r_w2a, r_w2b, r_w3, r_vec = (
        offs["wc1"], offs["wc2"], offs["w2a"], offs["w2b"], offs["w3"], offs["vec"])
    eps = 1e-5  # torch.nn.LayerNorm default

    def kernel(x_ref, p_ref, out_ref):
        def layer_norm(h, g, b):
            # var = E[h^2] - mu^2: both reductions can issue back-to-back.
            mu = jnp.mean(h, axis=-1, keepdims=True)
            ex2 = jnp.mean(h * h, axis=-1, keepdims=True)
            var = ex2 - mu * mu
            return (h - mu) * lax.rsqrt(var + eps) * g + b

        # Packed activations: [laser | pos]
        laser = x_ref[:, :nb_laser]
        pos = x_ref[:, nb_laser:nb_laser + nb_pos]

        # Static views into the packed parameter slab (no per-param DMAs).
        wc1 = p_ref[r_wc1:r_wc1 + nb_laser, :L1]
        wc2 = p_ref[r_wc2:r_wc2 + L1, :L2]
        w2a = p_ref[r_w2a:r_w2a + L2, :H2]
        w2b = p_ref[r_w2b:r_w2b + nb_pos, :H2]
        w3 = p_ref[r_w3:r_w3 + H2, :nb_actions]
        g1 = p_ref[r_vec + 0:r_vec + 1, :L1]
        be1 = p_ref[r_vec + 1:r_vec + 2, :L1]
        g2 = p_ref[r_vec + 2:r_vec + 3, :L2]
        be2 = p_ref[r_vec + 3:r_vec + 4, :L2]
        g3 = p_ref[r_vec + 4:r_vec + 5, :H2]
        be3 = p_ref[r_vec + 5:r_vec + 6, :H2]
        bfc2 = p_ref[r_vec + 6:r_vec + 7, :H2]

        # conv1 (banded matmul) -> LN1_1 -> ReLU.  Conv bias omitted: it is a
        # constant along the LN axis and is exactly cancelled by the LN mean.
        h1 = jnp.dot(laser, wc1, preferred_element_type=jnp.float32)
        h1 = jnp.maximum(layer_norm(h1, g1, be1), 0.0)

        # conv2 (banded matmul) -> LN1_2 -> ReLU  (bias omitted, same reason)
        h2 = jnp.dot(h1, wc2, preferred_element_type=jnp.float32)
        h2 = jnp.maximum(layer_norm(h2, g2, be2), 0.0)

        # fc2(concat([h2, pos], 1)) == h2 @ W2a + pos @ W2b + b   -> LN2 -> ReLU
        h3 = (jnp.dot(h2, w2a, preferred_element_type=jnp.float32)
              + jnp.dot(pos, w2b, preferred_element_type=jnp.float32)
              + bfc2)
        h3 = jnp.maximum(layer_norm(h3, g3, be3), 0.0)

        # fc3 (no bias) -> Softsign  (reciprocal on the EUP slot)
        h4 = jnp.dot(h3, w3, preferred_element_type=jnp.float32)
        out_ref[...] = h4 * pl.reciprocal(1.0 + jnp.abs(h4), approx=False)

    return kernel


# ---------------------------------------------------------------------------
# Host-side glue: pack all parameters into a single (rows, 128k) f32 slab.
# Done ONCE (outside the per-step call).
# ---------------------------------------------------------------------------
def pack_actor_params(p, dims):
    nb_pos, nb_laser, L1, L2, H2, nb_actions = dims
    C = max(128, L1, L2, H2, nb_actions)
    C = ((C + 127) // 128) * 128

    blocks, offs, r = [], {}, 0
    for name in ("wc1", "wc2", "w2a", "w2b", "w3"):
        m = p[name].astype(jnp.float32)
        nr, nc = m.shape
        nr_pad = ((nr + 7) // 8) * 8
        blk = jnp.zeros((nr_pad, C), jnp.float32).at[:nr, :nc].set(m)
        offs[name] = r
        blocks.append(blk)
        r += nr_pad

    vecs = [p["g1"], p["be1"], p["g2"], p["be2"], p["g3"], p["be3"], p["bfc2"]]
    vblk = jnp.zeros((8, C), jnp.float32)
    for i, v in enumerate(vecs):
        v = jnp.ravel(v).astype(jnp.float32)
        vblk = vblk.at[i, :v.shape[0]].set(v)
    offs["vec"] = r
    blocks.append(vblk)
    r += 8

    return jnp.concatenate(blocks, axis=0), offs


# ---------------------------------------------------------------------------
# Wrapper: pack activations, pad batch to the tile size, launch the kernel.
# ---------------------------------------------------------------------------
def actor_forward(pos, laser, param_slab, offs, dims):
    nb_pos, nb_laser, L1, L2, H2, nb_actions = dims
    B = pos.shape[0]
    F = nb_laser + nb_pos

    TB = 128 if B >= 128 else ((B + 7) // 8) * 8          # batch tile (mult of 8)
    B_pad = pl.cdiv(B, TB) * TB

    x = jnp.concatenate([laser, pos], axis=1).astype(jnp.float32)
    if B_pad != B:
        x = jnp.pad(x, ((0, B_pad - B), (0, 0)))

    R, C = param_slab.shape
    out = pl.pallas_call(
        make_actor_kernel(dims, offs),
        out_shape=jax.ShapeDtypeStruct((B_pad, nb_actions), jnp.float32),
        grid=(B_pad // TB,),
        in_specs=[pl.BlockSpec((TB, F), lambda i: (i, 0)),
                  pl.BlockSpec((R, C), lambda i: (0, 0))],
        out_specs=pl.BlockSpec((TB, nb_actions), lambda i: (i, 0)),
        compiler_params=pltpu.CompilerParams(
            dimension_semantics=("parallel",)),
    )(x, param_slab)
    return out[:B]


# ---------------------------------------------------------------------------
# Glue: turn a 5-tap Conv1d(1,1,k=5,stride=2,pad=2) into a (L_in, L_out) matrix.
# ---------------------------------------------------------------------------
def conv1d_band_matrix(w_taps, length, stride=2, pad=2):
    k = w_taps.shape[0]
    out_len = (length + 2 * pad - k) // stride + 1
    mat = jnp.zeros((length, out_len), jnp.float32)
    j_idx = jnp.arange(out_len)
    for kk in range(k):
        i_idx = stride * j_idx + kk - pad
        valid = (i_idx >= 0) & (i_idx < length)
        mat = mat.at[jnp.clip(i_idx, 0, length - 1), j_idx].add(
            jnp.where(valid, w_taps[kk], 0.0))
    return mat


# ---------------------------------------------------------------------------
# Pure-JAX reference (independent conv; KEEPS the conv biases to demonstrate
# that the kernel's bias removal is a mathematical no-op under LayerNorm).
# ---------------------------------------------------------------------------
def _ln_ref(x, g, b, eps=1e-5):
    mu = jnp.mean(x, axis=-1, keepdims=True)
    var = jnp.mean((x - mu) ** 2, axis=-1, keepdims=True)
    return (x - mu) / jnp.sqrt(var + eps) * g + b


def _conv_ref(x, taps, bias):
    y = lax.conv_general_dilated(
        x[:, None, :], taps[None, None, :], window_strides=(2,),
        padding=[(2, 2)], dimension_numbers=("NCH", "OIH", "NCH"))
    return y[:, 0, :] + bias


def actor_reference(pos, laser, p):
    h1 = _conv_ref(laser, p["c1_taps"], p["b1"])
    h1 = jnp.maximum(_ln_ref(h1, p["g1"], p["be1"]), 0.0)
    h2 = _conv_ref(h1, p["c2_taps"], p["b2"])
    h2 = jnp.maximum(_ln_ref(h2, p["g2"], p["be2"]), 0.0)
    h3 = jnp.concatenate([h2, pos], axis=1) @ jnp.concatenate(
        [p["w2a"], p["w2b"]], axis=0) + p["bfc2"]
    h3 = jnp.maximum(_ln_ref(h3, p["g3"], p["be3"]), 0.0)
    h4 = h3 @ p["w3"]
    return h4 / (1.0 + jnp.abs(h4))


if __name__ == "__main__":
    # Small shapes consistent with the module (hidden2 = module default 128).
    B, nb_pos, nb_laser, nb_actions, hidden2 = 4, 4, 32, 2, 128
    L1, L2 = nb_laser // 2, nb_laser // 4
    dims = (nb_pos, nb_laser, L1, L2, hidden2, nb_actions)

    key = jax.random.PRNGKey(0)
    ks = jax.random.split(key, 14)

    pos = jax.random.normal(ks[0], (B, nb_pos), jnp.float32)
    laser = jax.random.normal(ks[1], (B, nb_laser), jnp.float32)

    # Deterministic synthetic parameters (shapes/init ranges mirror the module).
    c1_taps = jax.random.uniform(ks[2], (5,), jnp.float32, -1.0, 1.0)   # fanin=1
    c2_taps = jax.random.uniform(ks[3], (5,), jnp.float32, -1.0, 1.0)
    b1 = jax.random.uniform(ks[4], (), jnp.float32, -0.447, 0.447)      # ~1/sqrt(5)
    b2 = jax.random.uniform(ks[5], (), jnp.float32, -0.447, 0.447)
    vw = 1.0 / jnp.sqrt(jnp.float32(hidden2))
    w2_full = jax.random.uniform(ks[6], (L2 + nb_pos, hidden2), jnp.float32, -vw, vw)
    vb = 1.0 / jnp.sqrt(jnp.float32(L2 + nb_pos))
    bfc2 = jax.random.uniform(ks[7], (hidden2,), jnp.float32, -vb, vb)
    w3 = jax.random.uniform(ks[8], (hidden2, nb_actions), jnp.float32, -0.003, 0.003)
    g1 = 1.0 + 0.1 * jax.random.normal(ks[9], (L1,), jnp.float32)
    be1 = 0.1 * jax.random.normal(ks[10], (L1,), jnp.float32)
    g2 = 1.0 + 0.1 * jax.random.normal(ks[11], (L2,), jnp.float32)
    be2 = 0.1 * jax.random.normal(ks[12], (L2,), jnp.float32)
    g3 = jnp.ones((hidden2,), jnp.float32)
    be3 = jnp.zeros((hidden2,), jnp.float32)

    params = dict(
        c1_taps=c1_taps, c2_taps=c2_taps, b1=b1, b2=b2,
        wc1=conv1d_band_matrix(c1_taps, nb_laser),
        wc2=conv1d_band_matrix(c2_taps, L1),
        g1=g1, be1=be1, g2=g2, be2=be2, g3=g3, be3=be3,
        w2a=w2_full[:L2], w2b=w2_full[L2:], bfc2=bfc2, w3=w3,
    )

    # One-time parameter packing (single DMA into the kernel).
    param_slab, offs = pack_actor_params(params, dims)

    out = jax.block_until_ready(actor_forward(pos, laser, param_slab, offs, dims))
    ref = jax.block_until_ready(actor_reference(pos, laser, params))

    assert out.shape == (B, nb_actions)
    assert jnp.allclose(out, ref, atol=1e-4, rtol=1e-4), (out, ref)
    print("KERNEL_OK")
</pallas_src>

<mosaic_0001>
module attributes {stable_mosaic.version = 11 : i64} {
  func.func @kernel(%arg0: i32, %arg1: memref<8x36xf32, #tpu.memory_space<vmem>>, %arg2: memref<200x128xf32, #tpu.memory_space<vmem>>, %arg3: memref<8x2xf32, #tpu.memory_space<vmem>>) attributes {dimension_semantics = [#tpu.dimension_semantics<parallel>], iteration_bounds = array<i64: 1>, scalar_prefetch = 0 : i64, scratch_operands = 0 : i64, tpu.core_type = #tpu.core_type<tc>, window_params = [{transform_indices = @transform_0, window_bounds = array<i64: 8, 36>}, {pipeline_mode = #tpu.pipeline_mode<synchronous>, transform_indices = @transform_1, window_bounds = array<i64: 200, 128>}, {transform_indices = @transform_2, window_bounds = array<i64: 8, 2>}]} {
    %c0 = arith.constant 0 : index
    %c0_0 = arith.constant 0 : index
    %0 = vector.load %arg1[%c0, %c0_0] : memref<8x36xf32, #tpu.memory_space<vmem>>, vector<8x32xf32>
    %c0_1 = arith.constant 0 : index
    %c32 = arith.constant 32 : index
    %1 = vector.load %arg1[%c0_1, %c32] : memref<8x36xf32, #tpu.memory_space<vmem>>, vector<8x4xf32>
    %c0_2 = arith.constant 0 : index
    %c0_3 = arith.constant 0 : index
    %2 = vector.load %arg2[%c0_2, %c0_3] : memref<200x128xf32, #tpu.memory_space<vmem>>, vector<32x16xf32>
    %c32_4 = arith.constant 32 : index
    %c0_5 = arith.constant 0 : index
    %3 = vector.load %arg2[%c32_4, %c0_5] : memref<200x128xf32, #tpu.memory_space<vmem>>, vector<16x8xf32>
    %c48 = arith.constant 48 : index
    %c0_6 = arith.constant 0 : index
    %4 = vector.load %arg2[%c48, %c0_6] : memref<200x128xf32, #tpu.memory_space<vmem>>, vector<8x128xf32>
    %c56 = arith.constant 56 : index
    %c0_7 = arith.constant 0 : index
    %5 = vector.load %arg2[%c56, %c0_7] : memref<200x128xf32, #tpu.memory_space<vmem>>, vector<4x128xf32>
    %c64 = arith.constant 64 : index
    %c0_8 = arith.constant 0 : index
    %6 = vector.load %arg2[%c64, %c0_8] : memref<200x128xf32, #tpu.memory_space<vmem>>, vector<128x2xf32>
    %c192 = arith.constant 192 : index
    %c0_9 = arith.constant 0 : index
    %7 = vector.load %arg2[%c192, %c0_9] : memref<200x128xf32, #tpu.memory_space<vmem>>, vector<1x16xf32>
    %c193 = arith.constant 193 : index
    %c0_10 = arith.constant 0 : index
    %8 = vector.load %arg2[%c193, %c0_10] : memref<200x128xf32, #tpu.memory_space<vmem>>, vector<1x16xf32>
    %c194 = arith.constant 194 : index
    %c0_11 = arith.constant 0 : index
    %9 = vector.load %arg2[%c194, %c0_11] : memref<200x128xf32, #tpu.memory_space<vmem>>, vector<1x8xf32>
    %c195 = arith.constant 195 : index
    %c0_12 = arith.constant 0 : index
    %10 = vector.load %arg2[%c195, %c0_12] : memref<200x128xf32, #tpu.memory_space<vmem>>, vector<1x8xf32>
    %c196 = arith.constant 196 : index
    %c0_13 = arith.constant 0 : index
    %11 = vector.load %arg2[%c196, %c0_13] : memref<200x128xf32, #tpu.memory_space<vmem>>, vector<1x128xf32>
    %c197 = arith.constant 197 : index
    %c0_14 = arith.constant 0 : index
    %12 = vector.load %arg2[%c197, %c0_14] : memref<200x128xf32, #tpu.memory_space<vmem>>, vector<1x128xf32>
    %c198 = arith.constant 198 : index
    %c0_15 = arith.constant 0 : index
    %13 = vector.load %arg2[%c198, %c0_15] : memref<200x128xf32, #tpu.memory_space<vmem>>, vector<1x128xf32>
    %cst = arith.constant dense<0.000000e+00> : vector<8x16xf32>
    %14 = tpu.matmul %0, %2, %cst {dimension_numbers = #tpu.dot_dimension_numbers<[1], [0], [0], [1], [0, 0, 1, 1], [], []>} : vector<8x32xf32>, vector<32x16xf32>, vector<8x16xf32> -> vector<8x16xf32>
    %cst_16 = arith.constant dense<0.000000e+00> : vector<8xf32>
    %15 = vector.multi_reduction <add>, %14, %cst_16 [1] : vector<8x16xf32> to vector<8xf32>
    %16 = vector.shape_cast %15 : vector<8xf32> to vector<8x1xf32>
    %cst_17 = arith.constant 1.600000e+01 : f32
    %17 = vector.broadcast %cst_17 : f32 to vector<8x1xf32>
    %18 = arith.divf %16, %17 : vector<8x1xf32>
    %19 = arith.mulf %14, %14 : vector<8x16xf32>
    %cst_18 = arith.constant dense<0.000000e+00> : vector<8xf32>
    %20 = vector.multi_reduction <add>, %19, %cst_18 [1] : vector<8x16xf32> to vector<8xf32>
    %21 = vector.shape_cast %20 : vector<8xf32> to vector<8x1xf32>
    %cst_19 = arith.constant 1.600000e+01 : f32
    %22 = vector.broadcast %cst_19 : f32 to vector<8x1xf32>
    %23 = arith.divf %21, %22 : vector<8x1xf32>
    %24 = arith.mulf %18, %18 : vector<8x1xf32>
    %25 = arith.subf %23, %24 : vector<8x1xf32>
    %26 = vector.broadcast %18 : vector<8x1xf32> to vector<8x16xf32>
    %27 = arith.subf %14, %26 : vector<8x16xf32>
    %cst_20 = arith.constant 9.99999974E-6 : f32
    %28 = vector.broadcast %cst_20 : f32 to vector<8x1xf32>
    %29 = arith.addf %25, %28 : vector<8x1xf32>
    %30 = math.rsqrt %29 : vector<8x1xf32>
    %31 = vector.broadcast %30 : vector<8x1xf32> to vector<8x16xf32>
    %32 = arith.mulf %27, %31 : vector<8x16xf32>
    %33 = vector.broadcast %7 : vector<1x16xf32> to vector<8x16xf32>
    %34 = arith.mulf %32, %33 : vector<8x16xf32>
    %35 = vector.broadcast %8 : vector<1x16xf32> to vector<8x16xf32>
    %36 = arith.addf %34, %35 : vector<8x16xf32>
    %cst_21 = arith.constant 0.000000e+00 : f32
    %37 = vector.broadcast %cst_21 : f32 to vector<8x16xf32>
    %38 = arith.maximumf %36, %37 : vector<8x16xf32>
    %cst_22 = arith.constant dense<0.000000e+00> : vector<8x8xf32>
    %39 = tpu.matmul %38, %3, %cst_22 {dimension_numbers = #tpu.dot_dimension_numbers<[1], [0], [0], [1], [0, 0, 1, 1], [], []>} : vector<8x16xf32>, vector<16x8xf32>, vector<8x8xf32> -> vector<8x8xf32>
    %cst_23 = arith.constant dense<0.000000e+00> : vector<8xf32>
    %40 = vector.multi_reduction <add>, %39, %cst_23 [1] : vector<8x8xf32> to vector<8xf32>
    %41 = vector.shape_cast %40 : vector<8xf32> to vector<8x1xf32>
    %cst_24 = arith.constant 8.000000e+00 : f32
    %42 = vector.broadcast %cst_24 : f32 to vector<8x1xf32>
    %43 = arith.divf %41, %42 : vector<8x1xf32>
    %44 = arith.mulf %39, %39 : vector<8x8xf32>
    %cst_25 = arith.constant dense<0.000000e+00> : vector<8xf32>
    %45 = vector.multi_reduction <add>, %44, %cst_25 [1] : vector<8x8xf32> to vector<8xf32>
    %46 = vector.shape_cast %45 : vector<8xf32> to vector<8x1xf32>
    %cst_26 = arith.constant 8.000000e+00 : f32
    %47 = vector.broadcast %cst_26 : f32 to vector<8x1xf32>
    %48 = arith.divf %46, %47 : vector<8x1xf32>
    %49 = arith.mulf %43, %43 : vector<8x1xf32>
    %50 = arith.subf %48, %49 : vector<8x1xf32>
    %51 = vector.broadcast %43 : vector<8x1xf32> to vector<8x8xf32>
    %52 = arith.subf %39, %51 : vector<8x8xf32>
    %cst_27 = arith.constant 9.99999974E-6 : f32
    %53 = vector.broadcast %cst_27 : f32 to vector<8x1xf32>
    %54 = arith.addf %50, %53 : vector<8x1xf32>
    %55 = math.rsqrt %54 : vector<8x1xf32>
    %56 = vector.broadcast %55 : vector<8x1xf32> to vector<8x8xf32>
    %57 = arith.mulf %52, %56 : vector<8x8xf32>
    %58 = vector.broadcast %9 : vector<1x8xf32> to vector<8x8xf32>
    %59 = arith.mulf %57, %58 : vector<8x8xf32>
    %60 = vector.broadcast %10 : vector<1x8xf32> to vector<8x8xf32>
    %61 = arith.addf %59, %60 : vector<8x8xf32>
    %cst_28 = arith.constant 0.000000e+00 : f32
    %62 = vector.broadcast %cst_28 : f32 to vector<8x8xf32>
    %63 = arith.maximumf %61, %62 : vector<8x8xf32>
    %cst_29 = arith.constant dense<0.000000e+00> : vector<8x128xf32>
    %64 = tpu.matmul %63, %4, %cst_29 {dimension_numbers = #tpu.dot_dimension_numbers<[1], [0], [0], [1], [0, 0, 1, 1], [], []>} : vector<8x8xf32>, vector<8x128xf32>, vector<8x128xf32> -> vector<8x128xf32>
    %cst_30 = arith.constant dense<0.000000e+00> : vector<8x128xf32>
    %65 = tpu.matmul %1, %5, %cst_30 {dimension_numbers = #tpu.dot_dimension_numbers<[1], [0], [0], [1], [0, 0, 1, 1], [], []>} : vector<8x4xf32>, vector<4x128xf32>, vector<8x128xf32> -> vector<8x128xf32>
    %66 = arith.addf %64, %65 : vector<8x128xf32>
    %67 = vector.broadcast %13 : vector<1x128xf32> to vector<8x128xf32>
    %68 = arith.addf %66, %67 : vector<8x128xf32>
    %cst_31 = arith.constant dense<0.000000e+00> : vector<8xf32>
    %69 = vector.multi_reduction <add>, %68, %cst_31 [1] : vector<8x128xf32> to vector<8xf32>
    %70 = vector.shape_cast %69 : vector<8xf32> to vector<8x1xf32>
    %cst_32 = arith.constant 1.280000e+02 : f32
    %71 = vector.broadcast %cst_32 : f32 to vector<8x1xf32>
    %72 = arith.divf %70, %71 : vector<8x1xf32>
    %73 = arith.mulf %68, %68 : vector<8x128xf32>
    %cst_33 = arith.constant dense<0.000000e+00> : vector<8xf32>
    %74 = vector.multi_reduction <add>, %73, %cst_33 [1] : vector<8x128xf32> to vector<8xf32>
    %75 = vector.shape_cast %74 : vector<8xf32> to vector<8x1xf32>
    %cst_34 = arith.constant 1.280000e+02 : f32
    %76 = vector.broadcast %cst_34 : f32 to vector<8x1xf32>
    %77 = arith.divf %75, %76 : vector<8x1xf32>
    %78 = arith.mulf %72, %72 : vector<8x1xf32>
    %79 = arith.subf %77, %78 : vector<8x1xf32>
    %80 = vector.broadcast %72 : vector<8x1xf32> to vector<8x128xf32>
    %81 = arith.subf %68, %80 : vector<8x128xf32>
    %cst_35 = arith.constant 9.99999974E-6 : f32
    %82 = vector.broadcast %cst_35 : f32 to vector<8x1xf32>
    %83 = arith.addf %79, %82 : vector<8x1xf32>
    %84 = math.rsqrt %83 : vector<8x1xf32>
    %85 = vector.broadcast %84 : vector<8x1xf32> to vector<8x128xf32>
    %86 = arith.mulf %81, %85 : vector<8x128xf32>
    %87 = vector.broadcast %11 : vector<1x128xf32> to vector<8x128xf32>
    %88 = arith.mulf %86, %87 : vector<8x128xf32>
    %89 = vector.broadcast %12 : vector<1x128xf32> to vector<8x128xf32>
    %90 = arith.addf %88, %89 : vector<8x128xf32>
    %cst_36 = arith.constant 0.000000e+00 : f32
    %91 = vector.broadcast %cst_36 : f32 to vector<8x128xf32>
    %92 = arith.maximumf %90, %91 : vector<8x128xf32>
    %cst_37 = arith.constant dense<0.000000e+00> : vector<8x2xf32>
    %93 = tpu.matmul %92, %6, %cst_37 {dimension_numbers = #tpu.dot_dimension_numbers<[1], [0], [0], [1], [0, 0, 1, 1], [], []>} : vector<8x128xf32>, vector<128x2xf32>, vector<8x2xf32> -> vector<8x2xf32>
    %94 = math.absf %93 : vector<8x2xf32>
    %cst_38 = arith.constant 1.000000e+00 : f32
    %95 = vector.broadcast %cst_38 : f32 to vector<8x2xf32>
    %96 = arith.addf %95, %94 : vector<8x2xf32>
    %97 = tpu.reciprocal %96 : vector<8x2xf32> -> vector<8x2xf32>
    %98 = arith.mulf %93, %97 : vector<8x2xf32>
    %c0_39 = arith.constant 0 : index
    %c0_40 = arith.constant 0 : index
    %99 = vector.load %arg3[%c0_39, %c0_40] : memref<8x2xf32, #tpu.memory_space<vmem>>, vector<8x2xf32>
    tpu.vector_store %arg3[%c0_39, %c0_40], %98 {strides = array<i32>} : memref<8x2xf32, #tpu.memory_space<vmem>>, vector<8x2xf32>,
    return
  }
  func.func @transform_0(%arg0: i32) -> (i32, i32) {
    %c0_i32 = arith.constant 0 : i32
    %c0_i32_0 = arith.constant 0 : i32
    return %arg0, %c0_i32 : i32, i32
  }
  func.func @transform_1(%arg0: i32) -> (i32, i32) {
    %c0_i32 = arith.constant 0 : i32
    %c0_i32_0 = arith.constant 0 : i32
    %c0_i32_1 = arith.constant 0 : i32
    return %c0_i32, %c0_i32_0 : i32, i32
  }
  func.func @transform_2(%arg0: i32) -> (i32, i32) {
    %c0_i32 = arith.constant 0 : i32
    %c0_i32_0 = arith.constant 0 : i32
    return %arg0, %c0_i32 : i32, i32
  }
}

</mosaic_0001>

<bundles_post_ra>
// kernel: tpu_custom_call.1
= control target key start
LH: loop header
LB: loop body
LE: loop exit
PB: predicated region body
PF: predicated region fallthrough
CT: control target
= control target key end

     0   :  { %7 = vsyncpa [#allocation3], 0  ;;  %s823_s0 = inlined_call_operand.hbm [shape: f32[8,36], index: 0, kind: input, shape index: {}]   ;;  %s824_s1 = inlined_call_operand.hbm [shape: f32[200,128], index: 1, kind: input, shape index: {}]   ;;  %s825_s2 = inlined_call_operand.vmem [shape: f32[8,2], index: 2, kind: output, shape index: {}]  }
   0x1   :  { %8 = vsyncpa [#allocation5], 0  ;;  %s737_s9 = smov [#allocation2]   ;;  %s738_s11 = smov [#allocation4]  }
   0x2   :  { %s15_s10 = sshll.u32 %s737_s9, 4  ;;  %s24_s12 = sshll.u32 %s738_s11, 4  ;;  %s16_s10 = int_to_ptr.vmem [resolvable:$true] %s15_s10  ;;  %s760_s12 = int_to_ptr.vmem [resolvable:$true] %s24_s12 }
   0x3   :  { %s689_s15 = scalar_lea.hbm %s823_s0, 128 }
   0x4   :  { %p690_p0 = scmp.ne.s32.totalorder %s823_s0, %s689_s15  ;;  %p693_p1 = scmp.lt.u32.totalorder %s689_s15, %s823_s0 }
   0x6   :  { %p695_p2 = pnand %p693_p1, %p690_p0 }
   0x8   :  { %698 = shalt.err (!%p695_p2)
}
   0x9   :  { %s699_s20 = scalar_lea.vmem %s16_s10, 128  ;;  %p704_p4 = scmp.lt.s32.totalorder %s16_s10, %s16_s10 }
   0xa   :  { %p700_p3 = scmp.ne.s32.totalorder %s16_s10, %s699_s20  ;;  %p705_p5 = scmp.lt.s32.totalorder %s699_s20, %s699_s20 }
   0xc   :  { %p706_p6 = por %p705_p5, %p704_p4 }
   0xe   :  { %p707_p7 = pnand %p706_p6, %p700_p3 }
  0x10   :  { %710 = shalt.err (!%p707_p7)
}
  0x11   :  { %18 = dma.hbm_to_vmem [thread:$0]  %s823_s0, 128, %s16_s10, [#allocation3]  }
  0x12   :  { %s711_s25 = scalar_lea.hbm %s824_s1, 3200 }
  0x13   :  { %p712_p8 = scmp.ne.s32.totalorder %s824_s1, %s711_s25  ;;  %p715_p9 = scmp.lt.u32.totalorder %s711_s25, %s824_s1 }
  0x15   :  { %p717_p10 = pnand %p715_p9, %p712_p8 }
  0x17   :  { %720 = shalt.err (!%p717_p10)
}
  0x18   :  { %s721_s30 = scalar_lea.vmem %s760_s12, 3200  ;;  %p726_p12 = scmp.lt.s32.totalorder %s760_s12, %s760_s12 }
  0x19   :  { %p722_p11 = scmp.ne.s32.totalorder %s760_s12, %s721_s30  ;;  %p727_p13 = scmp.lt.s32.totalorder %s721_s30, %s721_s30 }
  0x1b   :  { %p728_p0 = por %p727_p13, %p726_p12 }
  0x1d   :  { %p729_p1 = pnand %p728_p0, %p722_p11 }
  0x1f   :  { %732 = shalt.err (!%p729_p1)
}
  0x20   :  { %s739_s0 = smov 128   ;;  %s740_s3 = smov 8  }
  0x21   :  { %30 = dma.hbm_to_vmem [thread:$0]  %s824_s1, 3200, %s760_s12, [#allocation5], %s739_s0, %s739_s0, %s740_s3  }
  0x22   :  { %733 = dma.done.wait [#allocation3], 128  }
  0x23   :  { %734 = vsyncadd [#allocation3], 4294967168 }
  0x24   :  { %735 = dma.done.wait [#allocation5], 3200  }
  0x25   :  { %736 = vsyncadd [#allocation5], 4294964096  ;;  %v741_v0 = vmov 0.0|0.0   ;;  %vm742_vm0 = vmmov 0   ;;  %v743_v1 = vmov 0.0   ;;  %v38_v2 = vld [vmem:[#allocation4] sm:$0xff] }
  0x26   :  { %640 = vmatprep.subr.bf16.mxu0 %v741_v0  ;;  %585 = vmatprep.mubr.msk.f32.mxu0 %vm742_vm0, %v743_v1  ;;  %v39_v3 = vld [vmem:[#allocation4 + $0x8] sm:$0xff]  ;;  %v40_v4 = vld [vmem:[#allocation4 + $0x10] sm:$0xff]  ;;  %v41_v6 = vld [vmem:[#allocation4 + $0x18] sm:$0xff]  ;;  %vm69_vm1 = vcmask 261120   ;;  %vm143_vm2 = vcmask 130048   ;;  %s744_s1 = smov 96  }
  0x27   :  { %649 = vmatprep.subr.bf16.mxu1 %v741_v0  ;;  %637 = vmatprep.mubr.msk.f32.mxu1 %vm742_vm0, %v743_v1  ;;  %v641_v5 = vpack.c.bf16 %v39_v3, %v38_v2  ;;  %v644_v7 = vpack.c.bf16 %v41_v6, %v40_v4  ;;  %v37_v8 = vld [vmem:[#allocation2] sm:$0xff]  ;;  %v42_v14 = vld [vmem:[#allocation4 + $0x20] sm:$0xff]  ;;  %v43_v15 = vld [vmem:[#allocation4 + $0x28] sm:$0xff]  ;;  %vm244_vm3 = vcmask 64512   ;;  %vm277_vm4 = vcmask 1043456  }
  0x28   :  { %v647_v16 = vpack.c.bf16 %v43_v15, %v42_v14  ;;  %v537_v26 = vld [vmem:[#allocation4 + $0xc0] ss:$0 sm:$0xff]  ;;  %v538_v28 = vld [vmem:[#allocation4 + $0xc1] ss:$0 sm:$0xff]  ;;  %v45_v37 = vld [vmem:[#allocation4 + $0x38] sm:$0xf] }
  0x29   :  { %642 = vmatpush3.bf16.msra.mxu0 %v641_v5  ;;  %vm274_vm5 = vcmask 31744   ;;  %v44_v39 = vld [vmem:[#allocation4 + $0x30] sm:$0xff]  ;;  %v540_v49 = vld [vmem:[#allocation4 + $0xc2] ss:$0 sm:$0xff]  ;;  %v541_v51 = vld [vmem:[#allocation4 + $0xc3] ss:$0 sm:$0xff] }
  0x2a   :  { %643 = vmatprep.subr.bf16.mxu0 %v741_v0  ;;  %v46_v57 = vld [vmem:[#allocation4 + $0x40] sm:$0xff]  ;;  %v47_v58 = vld [vmem:[#allocation4 + $0x48] sm:$0xff]  ;;  %v48_v3 = vld [vmem:[#allocation4 + $0x50] sm:$0xff]  ;;  %vm528_vm6 = vcmask 15360  }
  0x2b   :  { %v650_v59 = vpack.c.bf16 %v47_v58, %v46_v57  ;;  %v545_v60 = vld [vmem:[#allocation4 + $0xc6] ss:$0 sm:$0xff]  ;;  %v49_v4 = vld [vmem:[#allocation4 + $0x58] sm:$0xff]  ;;  %v56_v15 = vld [vmem:[#allocation4 + $0x90] sm:$0xff] }
  0x2c   :  { %v653_v5 = vpack.c.bf16 %v49_v4, %v48_v3  ;;  %v50_v6 = vld [vmem:[#allocation4 + $0x60] sm:$0xff] }
  0x2d   :  { %645 = vmatpush3.bf16.msra.mxu0 %v644_v7  ;;  %651 = vmatpush3.bf16.msra.mxu1 %v650_v59  ;;  %v51_v7 = vld [vmem:[#allocation4 + $0x68] sm:$0xff] }
  0x2e   :  { %646 = vmatprep.subr.bf16.mxu0 %v741_v0  ;;  %652 = vmatprep.subr.bf16.mxu1 %v741_v0 }
  0x30   :  { %586 = vmatmul.mubr.msk.f32.vlgmr.msra.gmra.mrb[0].mxu0 %vm69_vm1, %v37_v8 }
  0x31   :  { %592 = vmatprep.mubr.msk.f32.mxu0 %vm742_vm0, %v743_v1  ;;  %648 = vmatpush3.bf16.msra.mxu0 %v647_v16  ;;  %v57_v16 = vld [vmem:[#allocation4 + $0x98] sm:$0xff] }
  0x32   :  { %595 = vmatprep.subr.mxu0 %v743_v1  ;;  %654 = vmatpush3.bf16.msra.mxu1 %v653_v5 }
  0x33   :  { %655 = vmatprep.subr.bf16.mxu1 %v741_v0 }
 0x103   :  { %v139_v9 = vpop.f32.mrb[0].mxu0 }
 0x104   :  { %v587_v10 = vpop.f32.mrb[1].mxu0  ;;  %v144_v11 = vsel %vm143_vm2, %v139_v9, 0.0  ;;  %v149_v12 = vmul.f32 %v139_v9, %v139_v9 }
 0x105   :  { %145 = vadd.xlane.f32.xlu0 %v144_v11  ;;  %v53_v10 = vld [vmem:[#allocation4 + $0x78] sm:$0xff] }
 0x106   :  { %v150_v13 = vsel %vm143_vm2, %v149_v12, 0.0  ;;  %v54_v12 = vld [vmem:[#allocation4 + $0x80] sm:$0xff] }
 0x109   :  { %151 = vadd.xlane.f32.xlu0 %v150_v13  ;;  %v55_v13 = vld [vmem:[#allocation4 + $0x88] sm:$0xff] }
 0x10a   :  { %v662_v14 = vpack.c.bf16 %v55_v13, %v54_v12 }
 0x11f   :  { %272 = vrot.lane.b32.xlu0 %v37_v8, %s744_s1  ;;  %v656_v8 = vpack.c.bf16 %v51_v7, %v50_v6 }
 0x121   :  { %657 = vmatpush3.bf16.msra.mxu1 %v656_v8 }
 0x122   :  { %658 = vmatprep.subr.bf16.mxu1 %v741_v0 }
 0x192   :  { %v146_v17 = vpop.xlane.xlu0 %145 }
 0x193   :  { %v148_v18 = vmul.f32 0.0625, %v146_v17  ;;  %v665_v17 = vpack.c.bf16 %v57_v16, %v56_v15 }
 0x195   :  { %v154_v20 = vmul.f32 %v148_v18, %v148_v18  ;;  %v156_v24 = vsub.f32 %v139_v9, %v148_v18  ;;  %v52_v9 = vld [vmem:[#allocation4 + $0x70] sm:$0xff]  ;;  %v58_v18 = vld [vmem:[#allocation4 + $0xa0] sm:$0xff] }
 0x196   :  { %v152_v19 = vpop.xlane.xlu0 %151  ;;  %v659_v11 = vpack.c.bf16 %v53_v10, %v52_v9 }
 0x197   :  { %v153_v21 = vmul.f32 0.0625, %v152_v19  ;;  %v59_v19 = vld [vmem:[#allocation4 + $0xa8] sm:$0xff] }
 0x198   :  { %660 = vmatpush3.bf16.msra.mxu1 %v659_v11 }
 0x199   :  { %v155_v22 = vsub.f32 %v153_v21, %v154_v20  ;;  %661 = vmatprep.subr.bf16.mxu1 %v741_v0  ;;  %v668_v20 = vpack.c.bf16 %v59_v19, %v58_v18  ;;  %v60_v21 = vld [vmem:[#allocation4 + $0xb0] sm:$0xff] }
 0x19a   :  { %v273_v38 = vpop.permute.xlu0 %272 }
 0x19b   :  { %v157_v23 = vadd.f32 1e-05, %v155_v22  ;;  %v61_v22 = vld [vmem:[#allocation4 + $0xb8] sm:$0xff] }
 0x19c   :  { %663 = vmatpush3.bf16.msra.mxu1 %v662_v14 }
 0x19d   :  { %681 = vrsqrt.f32 %v157_v23  ;;  %664 = vmatprep.subr.bf16.mxu1 %v741_v0  ;;  %v671_v23 = vpack.c.bf16 %v61_v22, %v60_v21 }
 0x1a0   :  { %666 = vmatpush3.bf16.msra.mxu1 %v665_v17 }
 0x1a1   :  { %667 = vmatprep.subr.bf16.mxu1 %v741_v0 }
 0x1a4   :  { %669 = vmatpush3.bf16.msra.mxu1 %v668_v20 }
 0x1a5   :  { %670 = vmatprep.subr.bf16.mxu1 %v741_v0 }
 0x1a7   :  { %v682_v25 = vpop.eup %681 }
 0x1a8   :  { %v159_v27 = vmul.f32 %v682_v25, %v156_v24  ;;  %672 = vmatpush3.bf16.msra.mxu1 %v671_v23 }
 0x1aa   :  { %v164_v29 = vmul.f32 %v537_v26, %v159_v27 }
 0x1ac   :  { %v169_v30 = vadd.f32 %v538_v28, %v164_v29 }
 0x1ae   :  { %v170_v31 = vmax.f32 %v169_v30, 0.0 }
 0x1b0   :  { %593 = vmatmul.mubr.msk.f32.vlgmr.msra.gmra.mrb[2].mxu0 %vm143_vm2, %v170_v31 }
 0x1b1   :  { %597 = vmatprep.mubr.msk.f32.mxu0 %vm742_vm0, %v743_v1  ;;  %596 = vmatpush3.msk.msra.mxu0 %vm277_vm4, %v45_v37 }
 0x1b2   :  { %600 = vmatprep.subr.mxu0 %v743_v1 }
 0x1b4   :  { %598 = vmatmul.mubr.msk.f32.vlgmr.msra.gmra.mrb[4].mxu0 %vm274_vm5, %v273_v38 }
 0x1b5   :  { %601 = vmatpush3.msra.mxu0 %v44_v39  ;;  %602 = vmatprep.mubr.msk.f32.mxu0 %vm742_vm0, %v743_v1 }
 0x283   :  { %v240_v32 = vpop.f32.mrb[2].mxu0 }
 0x284   :  { %v594_v33 = vpop.f32.mrb[3].mxu0  ;;  %v245_v34 = vsel %vm244_vm3, %v240_v32, 0.0  ;;  %v250_v35 = vmul.f32 %v240_v32, %v240_v32 }
 0x285   :  { %246 = vadd.xlane.f32.xlu1 %v245_v34  ;;  %v546_v33 = vld [vmem:[#allocation4 + $0xc4] ss:$0 sm:$0xff] }
 0x286   :  { %v251_v36 = vsel %vm244_vm3, %v250_v35, 0.0  ;;  %v547_v35 = vld [vmem:[#allocation4 + $0xc5] ss:$0 sm:$0xff] }
 0x287   :  { %v347_v55 = vpop.f32.mrb[4].mxu0 }
 0x288   :  { %v599_v56 = vpop.f32.mrb[5].mxu0 }
 0x289   :  { %252 = vadd.xlane.f32.xlu1 %v251_v36 }
 0x312   :  { %v247_v40 = vpop.xlane.xlu1 %246 }
 0x313   :  { %v249_v41 = vmul.f32 0.125, %v247_v40 }
 0x315   :  { %v255_v43 = vmul.f32 %v249_v41, %v249_v41  ;;  %v257_v47 = vsub.f32 %v240_v32, %v249_v41 }
 0x316   :  { %v253_v42 = vpop.xlane.xlu1 %252 }
 0x317   :  { %v254_v44 = vmul.f32 0.125, %v253_v42 }
 0x319   :  { %v256_v45 = vsub.f32 %v254_v44, %v255_v43 }
 0x31b   :  { %v258_v46 = vadd.f32 1e-05, %v256_v45 }
 0x31d   :  { %683 = vrsqrt.f32 %v258_v46 }
 0x327   :  { %v684_v48 = vpop.eup %683 }
 0x328   :  { %v260_v50 = vmul.f32 %v684_v48, %v257_v47 }
 0x32a   :  { %v265_v52 = vmul.f32 %v540_v49, %v260_v50 }
 0x32c   :  { %v270_v53 = vadd.f32 %v541_v51, %v265_v52 }
 0x32e   :  { %v271_v54 = vmax.f32 %v270_v53, 0.0 }
 0x330   :  { %603 = vmatmul.mubr.msk.f32.vlgmr.msra.gmra.mrb[6].mxu0 %vm244_vm3, %v271_v54 }
 0x403   :  { %v420_v61 = vpop.f32.mrb[6].mxu0 }
 0x404   :  { %v421_v62 = vadd.f32 %v420_v61, %v347_v55  ;;  %v604_v63 = vpop.f32.mrb[7].mxu0 }
 0x406   :  { %v428_v1 = vadd.f32 %v545_v60, %v421_v62 }
 0x408   :  { %429 = vadd.xlane.f32.xlu1 %v428_v1  ;;  %v433_v2 = vmul.f32 %v428_v1, %v428_v1 }
 0x40c   :  { %434 = vadd.xlane.f32.xlu1 %v433_v2 }
 0x495   :  { %v430_v24 = vpop.xlane.xlu1 %429 }
 0x496   :  { %v432_v25 = vmul.f32 0.0078125, %v430_v24 }
 0x498   :  { %v437_v27 = vmul.f32 %v432_v25, %v432_v25  ;;  %v439_v31 = vsub.f32 %v428_v1, %v432_v25 }
 0x499   :  { %v435_v26 = vpop.xlane.xlu1 %434 }
 0x49a   :  { %v436_v28 = vmul.f32 0.0078125, %v435_v26 }
 0x49c   :  { %v438_v29 = vsub.f32 %v436_v28, %v437_v27 }
 0x49e   :  { %v440_v30 = vadd.f32 1e-05, %v438_v29 }
 0x4a0   :  { %685 = vrsqrt.f32 %v440_v30 }
 0x4aa   :  { %v686_v32 = vpop.eup %685 }
 0x4ab   :  { %v442_v34 = vmul.f32 %v686_v32, %v439_v31 }
 0x4ad   :  { %v447_v36 = vmul.f32 %v546_v33, %v442_v34 }
 0x4af   :  { %v452_v37 = vadd.f32 %v547_v35, %v447_v36 }
 0x4b1   :  { %v453_v38 = vmax.f32 %v452_v37, 0.0 }
 0x4b3   :  { %638 = vmatmul.mubr.f32.vlgmr.msra.gmra.mrb[0].mxu1 %v453_v38 }
 0x586   :  { %v520_v39 = vpop.f32.mrb[0].mxu1 }
 0x587   :  { %v524_v0 = vand.u32 2147483647, %v520_v39  ;;  %v639_v40 = vpop.f32.mrb[1].mxu1 }
 0x589   :  { %v525_v41 = vadd.f32 1.0, %v524_v0 }
 0x58b   :  { %687 = vrcp.f32 %v525_v41 }
 0x595   :  { %v688_v42 = vpop.eup %687 }
 0x596   :  { %v527_v43 = vmul.f32 %v688_v42, %v520_v39 }
 0x598   :  { %529 = vst.msk [vmem:[%s825_s2] sm:$0xff] %vm528_vm6, %v527_v43 }
 0x599   :  { %534 = vsyncpa [#allocation3], 1 }
 0x59a   :  { %535 = vsyncpa [#allocation5], 1 }

</bundles_post_ra>
